<compile_context>
chip_gen: v7x
topology: tpu7x:2x2x1
jax: 0.10.0
libtpu: 0.0.40
codegen_flags: <defaults>
</compile_context>

<pallas_src>
import functools

import jax
import jax.numpy as jnp
from jax.experimental import pallas as pl
from jax.experimental.pallas import tpu as pltpu


def _round_up(n: int, m: int) -> int:
    return ((n + m - 1) // m) * m


def mlp_kernel(xT_ref, w1T_ref, b1_ref, w2T_ref, b2_ref, w3T_ref, b3_ref, o_ref,
               *, compute_dtype):
    cd = compute_dtype
    # Layer 1: h1^T = w1^T @ x^T -> (H1, tile_m); tile_m rides the MXU N axis.
    h1 = jnp.dot(w1T_ref[...].astype(cd), xT_ref[...].astype(cd),
                 preferred_element_type=jnp.float32)
    h1 = jnp.maximum(h1 + b1_ref[...], 0.0)
    # nn.Dropout(0.2): identity in eval/inference mode.
    # TODO(synk): training-mode dropout would need pltpu.prng_seed/prng_random_bits masking.
    # Layer 2: h2^T = w2^T @ h1^T -> (H2, tile_m)
    h2 = jnp.dot(w2T_ref[...].astype(cd), h1.astype(cd),
                 preferred_element_type=jnp.float32)
    h2 = jnp.maximum(h2 + b2_ref[...], 0.0)
    # Layer 3: out^T = w3^T @ h2^T -> (1, tile_m); lane-dense store, no transpose anywhere.
    out = jnp.dot(w3T_ref[...].astype(cd), h2.astype(cd),
                  preferred_element_type=jnp.float32)
    o_ref[...] = (out + b3_ref[0]).astype(o_ref.dtype)


def prepare_params(params):
    """One-time preprocessing (hoisted out of the per-call path): feature-major weights."""
    return {
        "w1T": jnp.asarray(params["w1"]).T,              # (H1, D)
        "b1": jnp.asarray(params["b1"]).reshape(-1, 1),  # (H1, 1)
        "w2T": jnp.asarray(params["w2"]).T,              # (H2, H1)
        "b2": jnp.asarray(params["b2"]).reshape(-1, 1),  # (H2, 1)
        "w3T": jnp.asarray(params["w3"]).T,              # (1, H2)
        "b3": jnp.asarray(params["b3"]).reshape(-1),     # (1,) -> SMEM scalar
    }


def property_predictor(x, prepared, *, tile_m: int = 2048, use_bf16: bool = False):
    """x: (B, D) float32.  prepared: output of prepare_params().  Returns (B, 1) float32."""
    B, D = x.shape
    w1T, b1 = prepared["w1T"], prepared["b1"]
    w2T, b2 = prepared["w2T"], prepared["b2"]
    w3T, b3 = prepared["w3T"], prepared["b3"]
    H1, H2 = w1T.shape[0], w2T.shape[0]

    # Feature-major activations: one wrapper transpose makes the x tile lane-dense
    # (D on sublanes, batch on lanes) and kills the in-kernel XLU transpose.
    xT = x.T  # (D, B)

    # Batch tile: lane-aligned, big enough to amortize the ~0.35us/grid-step overhead, but capped
    # so the grid keeps >= 2 steps when the batch allows (v7x: 2 TensorCores share the grid).
    tile_m = max(128, _round_up(tile_m, 128))
    half = _round_up(pl.cdiv(_round_up(B, 128), 2), 128)
    tile_m = min(tile_m, max(128, half))
    # Ragged last block: no full-batch pad copy. Garbage lanes stay in their own columns
    # (matmuls contract over D/H only) and are dropped by the masked output write.
    num_tiles = pl.cdiv(B, tile_m)

    kernel = functools.partial(
        mlp_kernel, compute_dtype=jnp.bfloat16 if use_bf16 else x.dtype)

    out = pl.pallas_call(
        kernel,
        out_shape=jax.ShapeDtypeStruct((1, B), jnp.float32),
        grid_spec=pltpu.PrefetchScalarGridSpec(
            num_scalar_prefetch=0,
            grid=(num_tiles,),
            in_specs=[
                pl.BlockSpec((D, tile_m), lambda i: (0, i)),        # x^T tile, streamed over grid
                pl.BlockSpec((H1, D), lambda i: (0, 0)),            # w1^T (constant -> resident)
                pl.BlockSpec((H1, 1), lambda i: (0, 0)),            # b1
                pl.BlockSpec((H2, H1), lambda i: (0, 0)),           # w2^T
                pl.BlockSpec((H2, 1), lambda i: (0, 0)),            # b2
                pl.BlockSpec((1, H2), lambda i: (0, 0)),            # w3^T
                pl.BlockSpec(memory_space=pltpu.MemorySpace.SMEM),  # b3 scalar (no VMEM DMA)
            ],
            # lane-dense output row: one (1, tile_m) unmasked store per full grid step.
            out_specs=pl.BlockSpec((1, tile_m), lambda i: (0, i)),
        ),
        compiler_params=pltpu.CompilerParams(
            dimension_semantics=("parallel",),
        ),
    )(xT, w1T, b1, w2T, b2, w3T, b3)

    # (1, B) row-major has the same flat order as (B, 1); reshape is exact.
    return out.reshape(B, 1)


def init_params(key, input_dim, h1=64, h2=32, out=1):
    """Deterministic init mimicking nn.Linear's U(-1/sqrt(fan_in), 1/sqrt(fan_in))."""
    ks = jax.random.split(key, 6)

    def lin(kw, kb, fan_in, fan_out):
        bound = 1.0 / jnp.sqrt(fan_in)
        w = jax.random.uniform(kw, (fan_in, fan_out), jnp.float32, -bound, bound)
        b = jax.random.uniform(kb, (1, fan_out), jnp.float32, -bound, bound)
        return w, b

    w1, b1 = lin(ks[0], ks[1], input_dim, h1)
    w2, b2 = lin(ks[2], ks[3], h1, h2)
    w3, b3 = lin(ks[4], ks[5], h2, out)
    return {"w1": w1, "b1": b1, "w2": w2, "b2": b2, "w3": w3, "b3": b3}


def _reference(x, params):
    h = jnp.maximum(x @ params["w1"] + params["b1"], 0.0)
    h = jnp.maximum(h @ params["w2"] + params["b2"], 0.0)
    return h @ params["w3"] + params["b3"]


if __name__ == "__main__":
    key = jax.random.PRNGKey(0)
    k_x, k_x2, k_p = jax.random.split(key, 3)

    # input_dim = 6 numerical features + one-hot categorical columns -> 16 total
    batch, input_dim = 8, 16
    x = jax.random.normal(k_x, (batch, input_dim), jnp.float32)
    params = init_params(k_p, input_dim)
    prepared = prepare_params(params)

    y = jax.block_until_ready(property_predictor(x, prepared))
    y_ref = _reference(x, params)
    assert y.shape == (batch, 1)
    assert jnp.allclose(y, y_ref, atol=1e-4, rtol=1e-4)

    # Non-aligned batch -> multi-step grid with a ragged last block (no full-batch pad copy).
    batch2 = 300
    x2 = jax.random.normal(k_x2, (batch2, input_dim), jnp.float32)
    y2 = jax.block_until_ready(property_predictor(x2, prepared))
    y2_ref = _reference(x2, params)
    assert y2.shape == (batch2, 1)
    assert jnp.allclose(y2, y2_ref, atol=1e-4, rtol=1e-4)

    # bf16 MXU inputs with f32 accumulation (largest win on v5e); looser tolerance vs f32 ref.
    y3 = jax.block_until_ready(property_predictor(x2, prepared, use_bf16=True))
    assert y3.shape == (batch2, 1)
    assert jnp.allclose(y3, y2_ref, atol=5e-2, rtol=5e-2)

    print("KERNEL_OK")
</pallas_src>

<mosaic_0001>
module attributes {stable_mosaic.version = 11 : i64} {
  func.func @mlp_kernel(%arg0: i32, %arg1: memref<16x128xf32, #tpu.memory_space<vmem>>, %arg2: memref<64x16xf32, #tpu.memory_space<vmem>>, %arg3: memref<64x1xf32, #tpu.memory_space<vmem>>, %arg4: memref<32x64xf32, #tpu.memory_space<vmem>>, %arg5: memref<32x1xf32, #tpu.memory_space<vmem>>, %arg6: memref<1x32xf32, #tpu.memory_space<vmem>>, %arg7: memref<1xf32, #tpu.memory_space<smem>>, %arg8: memref<1x128xf32, #tpu.memory_space<vmem>>) attributes {dimension_semantics = [#tpu.dimension_semantics<parallel>], iteration_bounds = array<i64: 1>, scalar_prefetch = 0 : i64, scratch_operands = 0 : i64, tpu.core_type = #tpu.core_type<tc>, window_params = [{transform_indices = @transform_0, window_bounds = array<i64: 16, 128>}, {pipeline_mode = #tpu.pipeline_mode<synchronous>, transform_indices = @transform_1, window_bounds = array<i64: 64, 16>}, {pipeline_mode = #tpu.pipeline_mode<synchronous>, transform_indices = @transform_2, window_bounds = array<i64: 64, 1>}, {pipeline_mode = #tpu.pipeline_mode<synchronous>, transform_indices = @transform_3, window_bounds = array<i64: 32, 64>}, {pipeline_mode = #tpu.pipeline_mode<synchronous>, transform_indices = @transform_4, window_bounds = array<i64: 32, 1>}, {pipeline_mode = #tpu.pipeline_mode<synchronous>, transform_indices = @transform_5, window_bounds = array<i64: 1, 32>}, {transform_indices = @transform_6, window_bounds = array<i64: 1>}, {transform_indices = @transform_7, window_bounds = array<i64: 1, 128>}]} {
    %c0 = arith.constant 0 : index
    %c0_0 = arith.constant 0 : index
    %0 = vector.load %arg2[%c0, %c0_0] : memref<64x16xf32, #tpu.memory_space<vmem>>, vector<64x16xf32>
    %c0_1 = arith.constant 0 : index
    %c0_2 = arith.constant 0 : index
    %1 = vector.load %arg1[%c0_1, %c0_2] : memref<16x128xf32, #tpu.memory_space<vmem>>, vector<16x128xf32>
    %cst = arith.constant dense<0.000000e+00> : vector<64x128xf32>
    %2 = tpu.matmul %0, %1, %cst {dimension_numbers = #tpu.dot_dimension_numbers<[1], [0], [0], [1], [0, 0, 1, 1], [], []>} : vector<64x16xf32>, vector<16x128xf32>, vector<64x128xf32> -> vector<64x128xf32>
    %c0_3 = arith.constant 0 : index
    %c0_4 = arith.constant 0 : index
    %3 = vector.load %arg3[%c0_3, %c0_4] : memref<64x1xf32, #tpu.memory_space<vmem>>, vector<64x1xf32>
    %4 = vector.broadcast %3 : vector<64x1xf32> to vector<64x128xf32>
    %5 = arith.addf %2, %4 : vector<64x128xf32>
    %cst_5 = arith.constant 0.000000e+00 : f32
    %6 = vector.broadcast %cst_5 : f32 to vector<64x128xf32>
    %7 = arith.maximumf %5, %6 : vector<64x128xf32>
    %c0_6 = arith.constant 0 : index
    %c0_7 = arith.constant 0 : index
    %8 = vector.load %arg4[%c0_6, %c0_7] : memref<32x64xf32, #tpu.memory_space<vmem>>, vector<32x64xf32>
    %cst_8 = arith.constant dense<0.000000e+00> : vector<32x128xf32>
    %9 = tpu.matmul %8, %7, %cst_8 {dimension_numbers = #tpu.dot_dimension_numbers<[1], [0], [0], [1], [0, 0, 1, 1], [], []>} : vector<32x64xf32>, vector<64x128xf32>, vector<32x128xf32> -> vector<32x128xf32>
    %c0_9 = arith.constant 0 : index
    %c0_10 = arith.constant 0 : index
    %10 = vector.load %arg5[%c0_9, %c0_10] : memref<32x1xf32, #tpu.memory_space<vmem>>, vector<32x1xf32>
    %11 = vector.broadcast %10 : vector<32x1xf32> to vector<32x128xf32>
    %12 = arith.addf %9, %11 : vector<32x128xf32>
    %cst_11 = arith.constant 0.000000e+00 : f32
    %13 = vector.broadcast %cst_11 : f32 to vector<32x128xf32>
    %14 = arith.maximumf %12, %13 : vector<32x128xf32>
    %c0_12 = arith.constant 0 : index
    %c0_13 = arith.constant 0 : index
    %15 = vector.load %arg6[%c0_12, %c0_13] : memref<1x32xf32, #tpu.memory_space<vmem>>, vector<1x32xf32>
    %cst_14 = arith.constant dense<0.000000e+00> : vector<1x128xf32>
    %16 = tpu.matmul %15, %14, %cst_14 {dimension_numbers = #tpu.dot_dimension_numbers<[1], [0], [0], [1], [0, 0, 1, 1], [], []>} : vector<1x32xf32>, vector<32x128xf32>, vector<1x128xf32> -> vector<1x128xf32>
    %c0_15 = arith.constant 0 : index
    %17 = memref.load %arg7[%c0_15] : memref<1xf32, #tpu.memory_space<smem>>
    %18 = vector.broadcast %17 : f32 to vector<1x128xf32>
    %19 = arith.addf %16, %18 : vector<1x128xf32>
    %c0_16 = arith.constant 0 : index
    %c0_17 = arith.constant 0 : index
    %20 = vector.load %arg8[%c0_16, %c0_17] : memref<1x128xf32, #tpu.memory_space<vmem>>, vector<1x128xf32>
    tpu.vector_store %arg8[%c0_16, %c0_17], %19 {strides = array<i32>} : memref<1x128xf32, #tpu.memory_space<vmem>>, vector<1x128xf32>,
    return
  }
  func.func @transform_0(%arg0: i32) -> (i32, i32) {
    %c0_i32 = arith.constant 0 : i32
    %c0_i32_0 = arith.constant 0 : i32
    return %c0_i32, %arg0 : i32, i32
  }
  func.func @transform_1(%arg0: i32) -> (i32, i32) {
    %c0_i32 = arith.constant 0 : i32
    %c0_i32_0 = arith.constant 0 : i32
    %c0_i32_1 = arith.constant 0 : i32
    return %c0_i32, %c0_i32_0 : i32, i32
  }
  func.func @transform_2(%arg0: i32) -> (i32, i32) {
    %c0_i32 = arith.constant 0 : i32
    %c0_i32_0 = arith.constant 0 : i32
    %c0_i32_1 = arith.constant 0 : i32
    return %c0_i32, %c0_i32_0 : i32, i32
  }
  func.func @transform_3(%arg0: i32) -> (i32, i32) {
    %c0_i32 = arith.constant 0 : i32
    %c0_i32_0 = arith.constant 0 : i32
    %c0_i32_1 = arith.constant 0 : i32
    return %c0_i32, %c0_i32_0 : i32, i32
  }
  func.func @transform_4(%arg0: i32) -> (i32, i32) {
    %c0_i32 = arith.constant 0 : i32
    %c0_i32_0 = arith.constant 0 : i32
    %c0_i32_1 = arith.constant 0 : i32
    return %c0_i32, %c0_i32_0 : i32, i32
  }
  func.func @transform_5(%arg0: i32) -> (i32, i32) {
    %c0_i32 = arith.constant 0 : i32
    %c0_i32_0 = arith.constant 0 : i32
    %c0_i32_1 = arith.constant 0 : i32
    return %c0_i32, %c0_i32_0 : i32, i32
  }
  func.func @transform_6(%arg0: i32) -> i32 {
    %c0_i32 = arith.constant 0 : i32
    %c0_i32_0 = arith.constant 0 : i32
    return %c0_i32 : i32
  }
  func.func @transform_7(%arg0: i32) -> (i32, i32) {
    %c0_i32 = arith.constant 0 : i32
    %c0_i32_0 = arith.constant 0 : i32
    return %c0_i32, %arg0 : i32, i32
  }
}

</mosaic_0001>

<bundles_post_ra>
// kernel: tpu_custom_call.1
= control target key start
LH: loop header
LB: loop body
LE: loop exit
PB: predicated region body
PF: predicated region fallthrough
CT: control target
= control target key end

     0   :  { %vm86_vm0 = vcmask 130048   ;;  %v592_v4 = vmov 0   ;;  %s745_s0 = inlined_call_operand.vmem [shape: f32[16,8], index: 0, kind: input, shape index: {}]   ;;  %s746_s1 = inlined_call_operand.vmem [shape: f32[64,16], index: 1, kind: input, shape index: {}]   ;;  %s747_s2 = inlined_call_operand.vmem [shape: f32[64,1], index: 2, kind: input, shape index: {}]   ;;  %s748_s3 = inlined_call_operand.vmem [shape: f32[32,64], index: 3, kind: input, shape index: {}]   ;;  %s749_s4 = inlined_call_operand.vmem [shape: f32[32,1], index: 4, kind: input, shape index: {}]   ;;  %s750_s5 = inlined_call_operand.vmem [shape: f32[1,32], index: 5, kind: input, shape index: {}]   ;;  %s751_s6 = inlined_call_operand.<no memory space> [shape: f32[1], index: 6, kind: input, shape index: {}]   ;;  %s752_s7 = inlined_call_operand.hbm [shape: f32[1,8], index: 7, kind: output, shape index: {}]  }
   0x1   :  { %v36_v0 = vld [vmem:[%s745_s0] sm:$0xff]  ;;  %v37_v1 = vld [vmem:[%s745_s0 + $0x8] sm:$0xff]  ;;  %566 = vset.pattern.permute.xlu0 %v592_v4  ;;  %567 = vset.pattern.permute.xlu1 %v592_v4  ;;  %v40_v6 = vld [vmem:[%s747_s2 + $0x10] sm:$0xff] }
   0x2   :  { %v28_v2 = vld [vmem:[%s746_s1] sm:$0xff]  ;;  %v535_v3 = vpack.c.bf16 %v37_v1, %v36_v0  ;;  %v29_v7 = vld [vmem:[%s746_s1 + $0x8] sm:$0xff]  ;;  %v30_v8 = vld [vmem:[%s746_s1 + $0x10] sm:$0xff]  ;;  %58 = vperm.xlu1 %567, %v40_v6  }
   0x3   :  { %490 = vmatprep.mubr.msk.f32.mxu0 %vm86_vm0, %v28_v2  ;;  %v38_v5 = vld [vmem:[%s747_s2] sm:$0xff]  ;;  %v39_v9 = vld [vmem:[%s747_s2 + $0x8] sm:$0xff]  ;;  %v41_v10 = vld [vmem:[%s747_s2 + $0x18] sm:$0xff] }
   0x4   :  { %536 = vmatprep.subr.bf16.mxu0 %v535_v3  ;;  %48 = vperm.xlu0 %566, %v38_v5  }
   0x5   :  { %538 = vmatpush3.bf16.msra.mxu0 %v535_v3 }
   0x8   :  { %491 = vmatmul.mubr.msk.f32.vlgmr.msra.gmra.mrb[0].mxu0 %vm86_vm0, %v29_v7 }
   0x9   :  { %13 = vsyncpa [#allocation4], 0  ;;  %493 = vmatprep.mubr.msk.f32.mxu0 %vm86_vm0, %v30_v8  ;;  %v31_v11 = vld [vmem:[%s746_s1 + $0x18] sm:$0xff]  ;;  %53 = vperm.xlu0 %566, %v39_v9   ;;  %v32_v12 = vld [vmem:[%s746_s1 + $0x20] sm:$0xff]  ;;  %vm252_vm1 = vcmask 523264   ;;  %v593_v0 = vmov 0.0|0.0  }
   0xa   :  { %63 = vperm.xlu1 %567, %v41_v10   ;;  %v42_v13 = vld [vmem:[%s747_s2 + $0x20] sm:$0xff]  ;;  %v43_v14 = vld [vmem:[%s747_s2 + $0x28] sm:$0xff]  ;;  %v34_v16 = vld [vmem:[%s746_s1 + $0x30] sm:$0xff]  ;;  %555 = vmatprep.subr.bf16.mxu0 %v593_v0  ;;  %vm594_vm2 = vmmov 0   ;;  %v595_v1 = vmov 0.0   ;;  %vm357_vm3 = vcmask 261120  }
   0xb   :  { %v33_v15 = vld [vmem:[%s746_s1 + $0x28] sm:$0xff]  ;;  %v44_v17 = vld [vmem:[%s747_s2 + $0x30] sm:$0xff]  ;;  %v45_v18 = vld [vmem:[%s747_s2 + $0x38] sm:$0xff]  ;;  %s596_s28 = smov [#allocation3]  }
   0xc   :  { %494 = vmatmul.mubr.msk.f32.gmra.mrb[2].mxu0 %vm86_vm0, %v31_v11  ;;  %v35_v19 = vld [vmem:[%s746_s1 + $0x38] sm:$0xff]  ;;  %v228_v20 = vld [vmem:[%s749_s4] sm:$0xff]  ;;  %v229_v21 = vld [vmem:[%s749_s4 + $0x8] sm:$0xff]  ;;  %s438_s29 = sshll.u32 %s596_s28, 4  ;;  %s439_s29 = int_to_ptr.vmem [resolvable:$true] %s438_s29 }
   0xd   :  { %496 = vmatprep.mubr.msk.f32.mxu0 %vm86_vm0, %v32_v12  ;;  %68 = vperm.xlu0 %566, %v42_v13   ;;  %v230_v22 = vld [vmem:[%s749_s4 + $0x10] sm:$0xff]  ;;  %v231_v23 = vld [vmem:[%s749_s4 + $0x18] sm:$0xff]  ;;  %v224_v24 = vld [vmem:[%s748_s3] sm:$0xff]  ;;  %s568_s30 = scalar_lea.vmem %s439_s29, 16  ;;  %s572_s8 = scalar_lea.vmem %s439_s29, 32 }
   0xe   :  { %73 = vperm.xlu1 %567, %v43_v14   ;;  %518 = vmatprep.mubr.msk.f32.mxu1 %vm252_vm1, %v224_v24  ;;  %v225_v61 = vld [vmem:[%s748_s3 + $0x8] sm:$0xff]  ;;  %v226_v62 = vld [vmem:[%s748_s3 + $0x10] sm:$0xff]  ;;  %v227_v63 = vld [vmem:[%s748_s3 + $0x18] sm:$0xff]  ;;  %p569_p0 = scmp.ne.s32.totalorder %s439_s29, %s568_s30  ;;  %p573_p1 = scmp.lt.s32.totalorder %s439_s29, %s439_s29 }
   0xf   :  { %p574_p2 = scmp.lt.s32.totalorder %s572_s8, %s568_s30 }
  0x10   :  { %497 = vmatmul.mubr.msk.f32.gmra.mrb[4].mxu0 %vm86_vm0, %v33_v15 }
  0x11   :  { %499 = vmatprep.mubr.msk.f32.mxu0 %vm86_vm0, %v34_v16  ;;  %78 = vperm.xlu0 %566, %v44_v17   ;;  %p575_p3 = por %p574_p2, %p573_p1 }
  0x12   :  { %83 = vperm.xlu1 %567, %v45_v18  }
  0x13   :  { %p576_p4 = pnand %p575_p3, %p569_p0 }
  0x14   :  { %500 = vmatmul.mubr.msk.f32.gmra.mrb[6].mxu0 %vm86_vm0, %v35_v19 }
  0x15   :  { %234 = vperm.xlu0 %566, %v228_v20   ;;  %532 = vmatprep.mubr.msk.f32.mxu0 %vm594_vm2, %v595_v1  ;;  %v354_v20 = vld [vmem:[%s750_s5] sm:$0x1] }
  0x16   :  { %239 = vperm.xlu1 %567, %v229_v21   ;;  %v356_v21 = vstv %s751_s6 }
  0x19   :  { %244 = vperm.xlu0 %566, %v230_v22  }
  0x1a   :  { %249 = vperm.xlu1 %567, %v231_v23  }
  0x81   :  { %v59_v26 = vpop.permute.xlu1 %58 }
  0x83   :  { %v49_v25 = vpop.permute.xlu0 %48 }
  0x88   :  { %v54_v27 = vpop.permute.xlu0 %53 }
  0x89   :  { %v64_v28 = vpop.permute.xlu1 %63 }
  0x8c   :  { %v69_v41 = vpop.permute.xlu0 %68 }
  0x8d   :  { %v74_v38 = vpop.permute.xlu1 %73 }
  0x90   :  { %v79_v53 = vpop.permute.xlu0 %78 }
  0x91   :  { %v84_v50 = vpop.permute.xlu1 %83 }
  0x94   :  { %v235_v3 = vpop.permute.xlu0 %234 }
  0x95   :  { %v240_v2 = vpop.permute.xlu1 %239 }
  0x98   :  { %v245_v12 = vpop.permute.xlu0 %244 }
  0x99   :  { %v250_v9 = vpop.permute.xlu1 %249 }
  0xdb   :  { %v492_v29 = vpop.f32.mrb[0].mxu0 }
  0xdc   :  { %v183_v30 = vadd.f32 %v492_v29, %v54_v27  ;;  %v177_v31 = vpop.f32.mrb[1].mxu0 }
  0xdd   :  { %v178_v32 = vadd.f32 %v177_v31, %v49_v25 }
  0xde   :  { %v217_v33 = vmax.f32 %v183_v30, 0.0 }
  0xdf   :  { %v216_v34 = vmax.f32 %v178_v32, 0.0  ;;  %v495_v35 = vpop.f32.mrb[2].mxu0 }
  0xe0   :  { %v193_v36 = vadd.f32 %v495_v35, %v64_v28  ;;  %v187_v37 = vpop.f32.mrb[3].mxu0 }
  0xe1   :  { %v188_v39 = vadd.f32 %v187_v37, %v59_v26  ;;  %v539_v40 = vpack.c.bf16 %v217_v33, %v216_v34 }
  0xe2   :  { %v219_v42 = vmax.f32 %v193_v36, 0.0 }
  0xe3   :  { %v218_v43 = vmax.f32 %v188_v39, 0.0  ;;  %v498_v44 = vpop.f32.mrb[4].mxu0  ;;  %540 = vmatprep.subr.bf16.mxu1 %v539_v40 }
  0xe4   :  { %v203_v45 = vadd.f32 %v498_v44, %v74_v38  ;;  %v197_v46 = vpop.f32.mrb[5].mxu0  ;;  %542 = vmatpush3.bf16.msra.mxu1 %v539_v40 }
  0xe5   :  { %v543_v47 = vpack.c.bf16 %v219_v42, %v218_v43  ;;  %v198_v48 = vadd.f32 %v197_v46, %v69_v41 }
  0xe6   :  { %v221_v49 = vmax.f32 %v203_v45, 0.0 }
  0xe7   :  { %v220_v51 = vmax.f32 %v198_v48, 0.0  ;;  %v501_v52 = vpop.f32.mrb[6].mxu0  ;;  %544 = vmatprep.subr.bf16.mxu1 %v543_v47 }
  0xe8   :  { %v213_v54 = vadd.f32 %v501_v52, %v84_v50  ;;  %v207_v55 = vpop.f32.mrb[7].mxu0  ;;  %546 = vmatpush3.bf16.msra.mxu1 %v543_v47 }
  0xe9   :  { %v547_v56 = vpack.c.bf16 %v221_v49, %v220_v51  ;;  %v208_v57 = vadd.f32 %v207_v55, %v79_v53 }
  0xea   :  { %v223_v58 = vmax.f32 %v213_v54, 0.0 }
  0xeb   :  { %v222_v59 = vmax.f32 %v208_v57, 0.0  ;;  %548 = vmatprep.subr.bf16.mxu1 %v547_v56 }
  0xec   :  { %550 = vmatpush3.bf16.msra.mxu1 %v547_v56 }
  0xed   :  { %v551_v60 = vpack.c.bf16 %v223_v58, %v222_v59 }
  0xef   :  { %552 = vmatprep.subr.bf16.mxu1 %v551_v60 }
  0xf0   :  { %554 = vmatpush3.bf16.msra.mxu1 %v551_v60 }
  0xf3   :  { %519 = vmatmul.mubr.msk.f32.vlgmr.msra.gmra.mrb[0].mxu1 %vm252_vm1, %v225_v61 }
  0xf4   :  { %521 = vmatprep.mubr.msk.f32.mxu1 %vm252_vm1, %v226_v62 }
  0xf7   :  { %522 = vmatmul.mubr.msk.f32.gmra.mrb[2].mxu1 %vm252_vm1, %v227_v63 }
 0x1c6   :  { %v520_v4 = vpop.f32.mrb[0].mxu1 }
 0x1c7   :  { %v337_v5 = vadd.f32 %v520_v4, %v240_v2  ;;  %v331_v6 = vpop.f32.mrb[1].mxu1 }
 0x1c8   :  { %v332_v7 = vadd.f32 %v331_v6, %v235_v3 }
 0x1c9   :  { %v351_v8 = vmax.f32 %v337_v5, 0.0 }
 0x1ca   :  { %v350_v10 = vmax.f32 %v332_v7, 0.0  ;;  %v523_v11 = vpop.f32.mrb[2].mxu1 }
 0x1cb   :  { %v347_v13 = vadd.f32 %v523_v11, %v250_v9  ;;  %v341_v14 = vpop.f32.mrb[3].mxu1 }
 0x1cc   :  { %v556_v15 = vpack.c.bf16 %v351_v8, %v350_v10  ;;  %v342_v16 = vadd.f32 %v341_v14, %v245_v12 }
 0x1cd   :  { %v353_v17 = vmax.f32 %v347_v13, 0.0 }
 0x1ce   :  { %v352_v18 = vmax.f32 %v342_v16, 0.0  ;;  %557 = vmatpush3.bf16.msra.mxu0 %v556_v15 }
 0x1cf   :  { %558 = vmatprep.subr.bf16.mxu0 %v593_v0 }
 0x1d0   :  { %v559_v19 = vpack.c.bf16 %v353_v17, %v352_v18 }
 0x1d2   :  { %560 = vmatpush3.bf16.msra.mxu0 %v559_v19 }
 0x1d5   :  { %533 = vmatmul.mubr.msk.f32.vlgmr.msra.gmra.mrb[8].mxu0 %vm357_vm3, %v354_v20 }
 0x2a8   :  { %v427_v22 = vpop.f32.mrb[8].mxu0 }
 0x2a9   :  { %v428_v23 = vadd.f32 %v427_v22, %v356_v21  ;;  %v534_v24 = vpop.f32.mrb[9].mxu0 }
 0x2ab   :  { %431 = vst [vmem:[#allocation3] sm:$0x1] %v428_v23 }
 0x2ac   :  { %579 = shalt.err (!%p576_p4)
}
 0x2ad   :  { %s580_s10 = scalar_lea.hbm %s752_s7, 16 }
 0x2ae   :  { %p581_p5 = scmp.ne.s32.totalorder %s752_s7, %s580_s10  ;;  %p584_p6 = scmp.lt.u32.totalorder %s580_s10, %s752_s7 }
 0x2b0   :  { %p586_p7 = pnand %p584_p6, %p581_p5 }
 0x2b2   :  { %589 = shalt.err (!%p586_p7)
}
 0x2b3   :  { %441 = dma.vmem_to_hbm [thread:$0]  %s439_s29, 16, %s752_s7, [#allocation4]  }
 0x2b4   :  { %590 = dma.done.wait [#allocation4], 16  }
 0x2b5   :  { %591 = vsyncadd [#allocation4], 4294967280 }
 0x2b6   :  { %445 = vsyncpa [#allocation4], 1 }

</bundles_post_ra>
